<compile_context>
chip_gen: v7x
topology: tpu7x:2x2x1
jax: 0.10.0
libtpu: 0.0.40
codegen_flags: <defaults>
</compile_context>

<pallas_src>
import functools

import jax
import jax.numpy as jnp
from jax.experimental import pallas as pl
from jax.experimental.pallas import tpu as pltpu


def _round_up(x, m):
    return ((x + m - 1) // m) * m


# ---------------------------------------------------------------------------
# Kernel
# ---------------------------------------------------------------------------
def _ppo_kernel(state_ref, w_ref, probs_ref, value_ref, *,
                s_pad, h2, out_w, action_dim):
    """Fused actor+critic MLP forward for one batch tile.

    state_ref : (bm, s_pad)        bf16
    w_ref     : (rows, pw)         bf16 packed [W1 | W2 | W3 | b1 b2 b3 mask]
    probs_ref : (bm, action_dim)   f32 softmax(actor logits)
    value_ref : (bm, 1)            f32 critic value
    """
    x = state_ref[...]                                          # (bm, s_pad) bf16

    # ---- static slices into the packed parameter buffer ---------------------
    w1 = w_ref[0:s_pad, 0:h2]                                   # (s_pad, h2)
    w2 = w_ref[s_pad:s_pad + h2, 0:h2]                          # (h2, h2) block-diag
    w3 = w_ref[s_pad + h2:s_pad + 2 * h2, 0:out_w]              # (h2, out_w)
    b_off = s_pad + 2 * h2
    b1 = w_ref[b_off + 0:b_off + 1, 0:h2].astype(jnp.float32)     # (1, h2)
    b2 = w_ref[b_off + 1:b_off + 2, 0:h2].astype(jnp.float32)     # (1, h2)
    b3 = w_ref[b_off + 2:b_off + 3, 0:out_w].astype(jnp.float32)  # (1, out_w)
    mask = w_ref[b_off + 3:b_off + 4, 0:out_w].astype(jnp.float32)  # softmax mask

    # ---- fused actor|critic MLP: 3 lane-dense bf16 MXU matmuls, f32 acc -----
    h = jnp.tanh(jnp.dot(x, w1, preferred_element_type=jnp.float32) + b1)
    h = jnp.tanh(jnp.dot(h.astype(jnp.bfloat16), w2,
                         preferred_element_type=jnp.float32) + b2)
    y = jnp.dot(h.astype(jnp.bfloat16), w3,
                preferred_element_type=jnp.float32) + b3          # (bm, out_w) f32

    # masked, max-subtracted softmax over the actor lanes only
    logits = y + mask                                             # -1e30 off-actor
    m = jnp.max(logits, axis=-1, keepdims=True)
    e = jnp.exp(logits - m)                                       # masked lanes -> 0
    denom = jnp.sum(e, axis=-1, keepdims=True)
    probs = e / denom                                             # exact divide

    probs_ref[...] = probs[:, :action_dim].astype(probs_ref.dtype)
    value_ref[...] = y[:, action_dim:action_dim + 1].astype(value_ref.dtype)


# ---------------------------------------------------------------------------
# Host-side parameter init & packing
# ---------------------------------------------------------------------------
def init_ppo_params(key, state_dim, action_dim, hidden_dim=64):
    """nn.Linear-style U(-1/sqrt(fan_in), 1/sqrt(fan_in)) init.

    Weights stored as (in_features, out_features); biases as (1, out)."""
    def linear(k, fan_in, fan_out):
        kw, kb = jax.random.split(k)
        bound = 1.0 / jnp.sqrt(fan_in)
        w = jax.random.uniform(kw, (fan_in, fan_out), jnp.float32, -bound, bound)
        b = jax.random.uniform(kb, (1, fan_out), jnp.float32, -bound, bound)
        return w, b

    keys = jax.random.split(key, 6)
    aw1, ab1 = linear(keys[0], state_dim, hidden_dim)
    aw2, ab2 = linear(keys[1], hidden_dim, hidden_dim)
    aw3, ab3 = linear(keys[2], hidden_dim, action_dim)
    cw1, cb1 = linear(keys[3], state_dim, hidden_dim)
    cw2, cb2 = linear(keys[4], hidden_dim, hidden_dim)
    cw3, cb3 = linear(keys[5], hidden_dim, 1)
    return dict(aw1=aw1, ab1=ab1, aw2=aw2, ab2=ab2, aw3=aw3, ab3=ab3,
                cw1=cw1, cb1=cb1, cw2=cw2, cb2=cb2, cw3=cw3, cb3=cb3)


def pack_ppo_params(params, state_dim, action_dim, hidden_dim):
    """Fuse actor+critic weights per layer and pack everything into one bf16
    (rows, pw) buffer: [W1_fused | W2_blockdiag | W3_fused | b1 b2 b3 mask]."""
    h2 = 2 * hidden_dim
    s_pad = _round_up(state_dim, 16)                 # bf16 sublane alignment
    out_w = max(128, _round_up(action_dim + 1, 128))
    pw = max(h2, out_w)

    w1 = jnp.zeros((s_pad, pw), jnp.float32)
    w1 = w1.at[:state_dim, :hidden_dim].set(params["aw1"])
    w1 = w1.at[:state_dim, hidden_dim:h2].set(params["cw1"])

    w2 = jnp.zeros((h2, pw), jnp.float32)
    w2 = w2.at[:hidden_dim, :hidden_dim].set(params["aw2"])
    w2 = w2.at[hidden_dim:h2, hidden_dim:h2].set(params["cw2"])

    w3 = jnp.zeros((h2, pw), jnp.float32)
    w3 = w3.at[:hidden_dim, :action_dim].set(params["aw3"])
    w3 = w3.at[hidden_dim:h2, action_dim:action_dim + 1].set(params["cw3"])

    extra = jnp.zeros((4, pw), jnp.float32)
    extra = extra.at[0, :hidden_dim].set(params["ab1"][0])
    extra = extra.at[0, hidden_dim:h2].set(params["cb1"][0])
    extra = extra.at[1, :hidden_dim].set(params["ab2"][0])
    extra = extra.at[1, hidden_dim:h2].set(params["cb2"][0])
    extra = extra.at[2, :action_dim].set(params["ab3"][0])
    extra = extra.at[2, action_dim].set(params["cb3"][0, 0])
    # row 3: precomputed softmax mask (0 on actor lanes, -1e30 elsewhere).
    extra = extra.at[3, :].set(-1e30)
    extra = extra.at[3, :action_dim].set(0.0)

    packed = jnp.concatenate([w1, w2, w3, extra], axis=0)
    rows_pad = _round_up(packed.shape[0], 16)
    if rows_pad != packed.shape[0]:
        packed = jnp.concatenate(
            [packed, jnp.zeros((rows_pad - packed.shape[0], pw), jnp.float32)], 0)
    packed = packed.astype(jnp.bfloat16)
    dims = dict(s_pad=s_pad, h2=h2, out_w=out_w, pw=pw)
    return packed, dims


# ---------------------------------------------------------------------------
# Wrapper
# ---------------------------------------------------------------------------
def _pick_batch_tile(B):
    """Batch tile: big enough to amortize ~0.35us/grid-step overhead, small
    enough that large rollout batches still give ~8 grid steps (2 TCs on v7x
    each with >=2 steps to pipeline the state DMA)."""
    B8 = _round_up(B, 8)
    if B8 <= 256:
        return B8                              # single tile, grid=(1,)
    target = _round_up((B8 + 7) // 8, 8)       # aim for ~8 grid steps
    return int(min(2048, max(256, target)))


def ppo_forward(state, packed, dims, action_dim):
    """Pallas implementation of PPOController.forward.

    state : (B, state_dim) f32
    returns (action_probs (B, action_dim) f32, value (B, 1) f32)
    """
    B, S = state.shape
    s_pad, h2, out_w = dims["s_pad"], dims["h2"], dims["out_w"]

    bm = _pick_batch_tile(B)
    B_pad = _round_up(B, bm)

    # bf16 state operand (padded); weights are already packed bf16.
    x = jnp.zeros((B_pad, s_pad), jnp.bfloat16).at[:B, :S].set(
        state.astype(jnp.bfloat16))

    kernel = functools.partial(_ppo_kernel, s_pad=s_pad, h2=h2,
                               out_w=out_w, action_dim=action_dim)

    flops = int(2 * B_pad * (s_pad * h2 + h2 * h2 + h2 * out_w))
    transcendentals = int(B_pad * (2 * h2 + out_w))          # tanh + exp
    bytes_accessed = int(2 * (x.size + packed.size)          # bf16 operands
                         + 4 * B_pad * (action_dim + 1))     # narrow f32 outs

    out_shapes = (jax.ShapeDtypeStruct((B_pad, action_dim), jnp.float32),
                  jax.ShapeDtypeStruct((B_pad, 1), jnp.float32))
    out_specs = (pl.BlockSpec((bm, action_dim), lambda i: (i, 0)),
                 pl.BlockSpec((bm, 1), lambda i: (i, 0)))
    state_spec = pl.BlockSpec((bm, s_pad), lambda i: (i, 0))

    def run(weight_spec):
        return pl.pallas_call(
            kernel,
            out_shape=out_shapes,
            grid=(B_pad // bm,),
            in_specs=[state_spec, weight_spec],
            out_specs=out_specs,
            compiler_params=pltpu.CompilerParams(
                dimension_semantics=("parallel",)),           # megacore on v7x
            cost_estimate=pl.CostEstimate(flops=flops,
                                          transcendentals=transcendentals,
                                          bytes_accessed=bytes_accessed),
        )(x, packed)

    try:
        # Weights are grid-invariant (constant index_map): single-buffer them.
        probs_pad, value_pad = run(
            pl.BlockSpec(packed.shape, lambda i: (0, 0),
                         pipeline_mode=pl.Buffered(1)))
    except Exception:
        # pipeline_mode / Buffered(1) not supported on this jax build.
        probs_pad, value_pad = run(pl.BlockSpec(packed.shape, lambda i: (0, 0)))

    return probs_pad[:B], value_pad[:B]


def ppo_forward_ref(state, params):
    """Pure-JAX f32 reference (mirrors the PyTorch module)."""
    h = jnp.tanh(state @ params["aw1"] + params["ab1"])
    h = jnp.tanh(h @ params["aw2"] + params["ab2"])
    logits = h @ params["aw3"] + params["ab3"]
    probs = jax.nn.softmax(logits, axis=-1)
    c = jnp.tanh(state @ params["cw1"] + params["cb1"])
    c = jnp.tanh(c @ params["cw2"] + params["cb2"])
    value = c @ params["cw3"] + params["cb3"]
    return probs, value


if __name__ == "__main__":
    # Small shapes implied by the module: state_dim=16, action_dim=8, hidden=64.
    B, STATE_DIM, ACTION_DIM, HIDDEN = 8, 16, 8, 64

    key = jax.random.PRNGKey(0)
    k_params, k_state = jax.random.split(key)

    params = init_ppo_params(k_params, STATE_DIM, ACTION_DIM, HIDDEN)
    packed, dims = pack_ppo_params(params, STATE_DIM, ACTION_DIM, HIDDEN)
    state = jax.random.normal(k_state, (B, STATE_DIM), jnp.float32)

    probs, value = ppo_forward(state, packed, dims, ACTION_DIM)
    jax.block_until_ready((probs, value))

    # sanity check against pure-JAX f32 reference (bf16 operands in the kernel
    # -> loosened tolerances; this is expected quantization error).
    probs_ref, value_ref = ppo_forward_ref(state, params)
    assert probs.shape == (B, ACTION_DIM) and value.shape == (B, 1)
    assert jnp.allclose(probs, probs_ref, atol=3e-2, rtol=3e-2)
    assert jnp.allclose(value, value_ref, atol=5e-2, rtol=5e-2)
    # exact divide in the kernel softmax -> rows sum to 1 to f32 precision
    assert jnp.allclose(jnp.sum(probs, axis=-1), 1.0, atol=1e-5)

    # TODO(synk): PPOController.act() samples from Categorical — sampling/RNG
    # stays in host JAX (jax.random.categorical on the returned probs) and is
    # not fused into the kernel.

    print("KERNEL_OK")
</pallas_src>

<mosaic_0001>
module attributes {stable_mosaic.version = 11 : i64} {
  func.func @_ppo_kernel(%arg0: i32, %arg1: memref<8x16xbf16, #tpu.memory_space<vmem>>, %arg2: memref<288x128xbf16, #tpu.memory_space<vmem>>, %arg3: memref<8x8xf32, #tpu.memory_space<vmem>>, %arg4: memref<8x1xf32, #tpu.memory_space<vmem>>) attributes {dimension_semantics = [#tpu.dimension_semantics<parallel>], iteration_bounds = array<i64: 1>, scalar_prefetch = 0 : i64, scratch_operands = 0 : i64, tpu.core_type = #tpu.core_type<tc>, window_params = [{transform_indices = @transform_0, window_bounds = array<i64: 8, 16>}, {pipeline_mode = #tpu.pipeline_mode<synchronous>, transform_indices = @transform_1, window_bounds = array<i64: 288, 128>}, {transform_indices = @transform_2, window_bounds = array<i64: 8, 8>}, {transform_indices = @transform_3, window_bounds = array<i64: 8, 1>}]} {
    %c0 = arith.constant 0 : index
    %c0_0 = arith.constant 0 : index
    %0 = vector.load %arg1[%c0, %c0_0] : memref<8x16xbf16, #tpu.memory_space<vmem>>, vector<8x16xbf16>
    %c0_1 = arith.constant 0 : index
    %c0_2 = arith.constant 0 : index
    %1 = vector.load %arg2[%c0_1, %c0_2] : memref<288x128xbf16, #tpu.memory_space<vmem>>, vector<16x128xbf16>
    %c16 = arith.constant 16 : index
    %c0_3 = arith.constant 0 : index
    %2 = vector.load %arg2[%c16, %c0_3] : memref<288x128xbf16, #tpu.memory_space<vmem>>, vector<128x128xbf16>
    %c144 = arith.constant 144 : index
    %c0_4 = arith.constant 0 : index
    %3 = vector.load %arg2[%c144, %c0_4] : memref<288x128xbf16, #tpu.memory_space<vmem>>, vector<128x128xbf16>
    %c272 = arith.constant 272 : index
    %c0_5 = arith.constant 0 : index
    %4 = vector.load %arg2[%c272, %c0_5] : memref<288x128xbf16, #tpu.memory_space<vmem>>, vector<1x128xbf16>
    %5 = arith.extf %4 : vector<1x128xbf16> to vector<1x128xf32>
    %c273 = arith.constant 273 : index
    %c0_6 = arith.constant 0 : index
    %6 = vector.load %arg2[%c273, %c0_6] : memref<288x128xbf16, #tpu.memory_space<vmem>>, vector<1x128xbf16>
    %7 = arith.extf %6 : vector<1x128xbf16> to vector<1x128xf32>
    %c274 = arith.constant 274 : index
    %c0_7 = arith.constant 0 : index
    %8 = vector.load %arg2[%c274, %c0_7] : memref<288x128xbf16, #tpu.memory_space<vmem>>, vector<1x128xbf16>
    %9 = arith.extf %8 : vector<1x128xbf16> to vector<1x128xf32>
    %c275 = arith.constant 275 : index
    %c0_8 = arith.constant 0 : index
    %10 = vector.load %arg2[%c275, %c0_8] : memref<288x128xbf16, #tpu.memory_space<vmem>>, vector<1x128xbf16>
    %11 = arith.extf %10 : vector<1x128xbf16> to vector<1x128xf32>
    %cst = arith.constant dense<0.000000e+00> : vector<8x128xf32>
    %12 = tpu.matmul %0, %1, %cst {dimension_numbers = #tpu.dot_dimension_numbers<[1], [0], [0], [1], [0, 0, 1, 1], [], []>} : vector<8x16xbf16>, vector<16x128xbf16>, vector<8x128xf32> -> vector<8x128xf32>
    %13 = vector.broadcast %5 : vector<1x128xf32> to vector<8x128xf32>
    %14 = arith.addf %12, %13 : vector<8x128xf32>
    %15 = math.tanh %14 : vector<8x128xf32>
    %16 = arith.truncf %15 : vector<8x128xf32> to vector<8x128xbf16>
    %cst_9 = arith.constant dense<0.000000e+00> : vector<8x128xf32>
    %17 = tpu.matmul %16, %2, %cst_9 {dimension_numbers = #tpu.dot_dimension_numbers<[1], [0], [0], [1], [0, 0, 1, 1], [], []>} : vector<8x128xbf16>, vector<128x128xbf16>, vector<8x128xf32> -> vector<8x128xf32>
    %18 = vector.broadcast %7 : vector<1x128xf32> to vector<8x128xf32>
    %19 = arith.addf %17, %18 : vector<8x128xf32>
    %20 = math.tanh %19 : vector<8x128xf32>
    %21 = arith.truncf %20 : vector<8x128xf32> to vector<8x128xbf16>
    %cst_10 = arith.constant dense<0.000000e+00> : vector<8x128xf32>
    %22 = tpu.matmul %21, %3, %cst_10 {dimension_numbers = #tpu.dot_dimension_numbers<[1], [0], [0], [1], [0, 0, 1, 1], [], []>} : vector<8x128xbf16>, vector<128x128xbf16>, vector<8x128xf32> -> vector<8x128xf32>
    %23 = vector.broadcast %9 : vector<1x128xf32> to vector<8x128xf32>
    %24 = arith.addf %22, %23 : vector<8x128xf32>
    %25 = vector.broadcast %11 : vector<1x128xf32> to vector<8x128xf32>
    %26 = arith.addf %24, %25 : vector<8x128xf32>
    %cst_11 = arith.constant dense<0xFF800000> : vector<8xf32>
    %27 = vector.multi_reduction <maximumf>, %26, %cst_11 [1] : vector<8x128xf32> to vector<8xf32>
    %28 = vector.shape_cast %27 : vector<8xf32> to vector<8x1xf32>
    %29 = vector.broadcast %28 : vector<8x1xf32> to vector<8x128xf32>
    %30 = arith.subf %26, %29 : vector<8x128xf32>
    %31 = math.exp %30 : vector<8x128xf32>
    %cst_12 = arith.constant dense<0.000000e+00> : vector<8xf32>
    %32 = vector.multi_reduction <add>, %31, %cst_12 [1] : vector<8x128xf32> to vector<8xf32>
    %33 = vector.shape_cast %32 : vector<8xf32> to vector<8x1xf32>
    %34 = vector.broadcast %33 : vector<8x1xf32> to vector<8x128xf32>
    %35 = arith.divf %31, %34 : vector<8x128xf32>
    %36 = vector.extract_strided_slice %35 {offsets = [0, 0], sizes = [8, 8], strides = [1, 1]} : vector<8x128xf32> to vector<8x8xf32>
    %c0_13 = arith.constant 0 : index
    %c0_14 = arith.constant 0 : index
    %37 = vector.load %arg3[%c0_13, %c0_14] : memref<8x8xf32, #tpu.memory_space<vmem>>, vector<8x8xf32>
    tpu.vector_store %arg3[%c0_13, %c0_14], %36 {strides = array<i32>} : memref<8x8xf32, #tpu.memory_space<vmem>>, vector<8x8xf32>,
    %38 = vector.extract_strided_slice %24 {offsets = [0, 8], sizes = [8, 1], strides = [1, 1]} : vector<8x128xf32> to vector<8x1xf32>
    %c0_15 = arith.constant 0 : index
    %c0_16 = arith.constant 0 : index
    %39 = vector.load %arg4[%c0_15, %c0_16] : memref<8x1xf32, #tpu.memory_space<vmem>>, vector<8x1xf32>
    tpu.vector_store %arg4[%c0_15, %c0_16], %38 {strides = array<i32>} : memref<8x1xf32, #tpu.memory_space<vmem>>, vector<8x1xf32>,
    return
  }
  func.func @transform_0(%arg0: i32) -> (i32, i32) {
    %c0_i32 = arith.constant 0 : i32
    %c0_i32_0 = arith.constant 0 : i32
    return %arg0, %c0_i32 : i32, i32
  }
  func.func @transform_1(%arg0: i32) -> (i32, i32) {
    %c0_i32 = arith.constant 0 : i32
    %c0_i32_0 = arith.constant 0 : i32
    %c0_i32_1 = arith.constant 0 : i32
    return %c0_i32, %c0_i32_0 : i32, i32
  }
  func.func @transform_2(%arg0: i32) -> (i32, i32) {
    %c0_i32 = arith.constant 0 : i32
    %c0_i32_0 = arith.constant 0 : i32
    return %arg0, %c0_i32 : i32, i32
  }
  func.func @transform_3(%arg0: i32) -> (i32, i32) {
    %c0_i32 = arith.constant 0 : i32
    %c0_i32_0 = arith.constant 0 : i32
    return %arg0, %c0_i32 : i32, i32
  }
}

module attributes {stable_mosaic.version = 11 : i64} {
  func.func @_ppo_kernel(%arg0: i32, %arg1: memref<8x16xbf16, #tpu.memory_space<vmem>>, %arg2: memref<288x128xbf16, #tpu.memory_space<vmem>>, %arg3: memref<8x8xf32, #tpu.memory_space<vmem>>, %arg4: memref<8x1xf32, #tpu.memory_space<vmem>>) attributes {dimension_semantics = [#tpu.dimension_semantics<parallel>], iteration_bounds = array<i64: 1>, scalar_prefetch = 0 : i64, scratch_operands = 0 : i64, tpu.core_type = #tpu.core_type<tc>, window_params = [{transform_indices = @transform_0, window_bounds = array<i64: 8, 16>}, {pipeline_mode = #tpu.pipeline_mode<synchronous>, transform_indices = @transform_1, window_bounds = array<i64: 288, 128>}, {transform_indices = @transform_2, window_bounds = array<i64: 8, 8>}, {transform_indices = @transform_3, window_bounds = array<i64: 8, 1>}]} {
    %c0 = arith.constant 0 : index
    %c0_0 = arith.constant 0 : index
    %0 = vector.load %arg1[%c0, %c0_0] : memref<8x16xbf16, #tpu.memory_space<vmem>>, vector<8x16xbf16>
    %c0_1 = arith.constant 0 : index
    %c0_2 = arith.constant 0 : index
    %1 = vector.load %arg2[%c0_1, %c0_2] : memref<288x128xbf16, #tpu.memory_space<vmem>>, vector<16x128xbf16>
    %c16 = arith.constant 16 : index
    %c0_3 = arith.constant 0 : index
    %2 = vector.load %arg2[%c16, %c0_3] : memref<288x128xbf16, #tpu.memory_space<vmem>>, vector<128x128xbf16>
    %c144 = arith.constant 144 : index
    %c0_4 = arith.constant 0 : index
    %3 = vector.load %arg2[%c144, %c0_4] : memref<288x128xbf16, #tpu.memory_space<vmem>>, vector<128x128xbf16>
    %c272 = arith.constant 272 : index
    %c0_5 = arith.constant 0 : index
    %4 = vector.load %arg2[%c272, %c0_5] : memref<288x128xbf16, #tpu.memory_space<vmem>>, vector<1x128xbf16>
    %5 = arith.extf %4 : vector<1x128xbf16> to vector<1x128xf32>
    %c273 = arith.constant 273 : index
    %c0_6 = arith.constant 0 : index
    %6 = vector.load %arg2[%c273, %c0_6] : memref<288x128xbf16, #tpu.memory_space<vmem>>, vector<1x128xbf16>
    %7 = arith.extf %6 : vector<1x128xbf16> to vector<1x128xf32>
    %c274 = arith.constant 274 : index
    %c0_7 = arith.constant 0 : index
    %8 = vector.load %arg2[%c274, %c0_7] : memref<288x128xbf16, #tpu.memory_space<vmem>>, vector<1x128xbf16>
    %9 = arith.extf %8 : vector<1x128xbf16> to vector<1x128xf32>
    %c275 = arith.constant 275 : index
    %c0_8 = arith.constant 0 : index
    %10 = vector.load %arg2[%c275, %c0_8] : memref<288x128xbf16, #tpu.memory_space<vmem>>, vector<1x128xbf16>
    %11 = arith.extf %10 : vector<1x128xbf16> to vector<1x128xf32>
    %cst = arith.constant dense<0.000000e+00> : vector<8x128xf32>
    %12 = tpu.matmul %0, %1, %cst {dimension_numbers = #tpu.dot_dimension_numbers<[1], [0], [0], [1], [0, 0, 1, 1], [], []>} : vector<8x16xbf16>, vector<16x128xbf16>, vector<8x128xf32> -> vector<8x128xf32>
    %13 = vector.broadcast %5 : vector<1x128xf32> to vector<8x128xf32>
    %14 = arith.addf %12, %13 : vector<8x128xf32>
    %15 = math.tanh %14 : vector<8x128xf32>
    %16 = arith.truncf %15 : vector<8x128xf32> to vector<8x128xbf16>
    %cst_9 = arith.constant dense<0.000000e+00> : vector<8x128xf32>
    %17 = tpu.matmul %16, %2, %cst_9 {dimension_numbers = #tpu.dot_dimension_numbers<[1], [0], [0], [1], [0, 0, 1, 1], [], []>} : vector<8x128xbf16>, vector<128x128xbf16>, vector<8x128xf32> -> vector<8x128xf32>
    %18 = vector.broadcast %7 : vector<1x128xf32> to vector<8x128xf32>
    %19 = arith.addf %17, %18 : vector<8x128xf32>
    %20 = math.tanh %19 : vector<8x128xf32>
    %21 = arith.truncf %20 : vector<8x128xf32> to vector<8x128xbf16>
    %cst_10 = arith.constant dense<0.000000e+00> : vector<8x128xf32>
    %22 = tpu.matmul %21, %3, %cst_10 {dimension_numbers = #tpu.dot_dimension_numbers<[1], [0], [0], [1], [0, 0, 1, 1], [], []>} : vector<8x128xbf16>, vector<128x128xbf16>, vector<8x128xf32> -> vector<8x128xf32>
    %23 = vector.broadcast %9 : vector<1x128xf32> to vector<8x128xf32>
    %24 = arith.addf %22, %23 : vector<8x128xf32>
    %25 = vector.broadcast %11 : vector<1x128xf32> to vector<8x128xf32>
    %26 = arith.addf %24, %25 : vector<8x128xf32>
    %cst_11 = arith.constant dense<0xFF800000> : vector<8xf32>
    %27 = vector.multi_reduction <maximumf>, %26, %cst_11 [1] : vector<8x128xf32> to vector<8xf32>
    %28 = vector.shape_cast %27 : vector<8xf32> to vector<8x1xf32>
    %29 = vector.broadcast %28 : vector<8x1xf32> to vector<8x128xf32>
    %30 = arith.subf %26, %29 : vector<8x128xf32>
    %31 = math.exp %30 : vector<8x128xf32>
    %cst_12 = arith.constant dense<0.000000e+00> : vector<8xf32>
    %32 = vector.multi_reduction <add>, %31, %cst_12 [1] : vector<8x128xf32> to vector<8xf32>
    %33 = vector.shape_cast %32 : vector<8xf32> to vector<8x1xf32>
    %34 = vector.broadcast %33 : vector<8x1xf32> to vector<8x128xf32>
    %35 = arith.divf %31, %34 : vector<8x128xf32>
    %36 = vector.extract_strided_slice %35 {offsets = [0, 0], sizes = [8, 8], strides = [1, 1]} : vector<8x128xf32> to vector<8x8xf32>
    %c0_13 = arith.constant 0 : index
    %c0_14 = arith.constant 0 : index
    %37 = vector.load %arg3[%c0_13, %c0_14] : memref<8x8xf32, #tpu.memory_space<vmem>>, vector<8x8xf32>
    tpu.vector_store %arg3[%c0_13, %c0_14], %36 {strides = array<i32>} : memref<8x8xf32, #tpu.memory_space<vmem>>, vector<8x8xf32>,
    %38 = vector.extract_strided_slice %24 {offsets = [0, 8], sizes = [8, 1], strides = [1, 1]} : vector<8x128xf32> to vector<8x1xf32>
    %c0_15 = arith.constant 0 : index
    %c0_16 = arith.constant 0 : index
    %39 = vector.load %arg4[%c0_15, %c0_16] : memref<8x1xf32, #tpu.memory_space<vmem>>, vector<8x1xf32>
    tpu.vector_store %arg4[%c0_15, %c0_16], %38 {strides = array<i32>} : memref<8x1xf32, #tpu.memory_space<vmem>>, vector<8x1xf32>,
    return
  }
  func.func @transform_0(%arg0: i32) -> (i32, i32) {
    %c0_i32 = arith.constant 0 : i32
    %c0_i32_0 = arith.constant 0 : i32
    return %arg0, %c0_i32 : i32, i32
  }
  func.func @transform_1(%arg0: i32) -> (i32, i32) {
    %c0_i32 = arith.constant 0 : i32
    %c0_i32_0 = arith.constant 0 : i32
    %c0_i32_1 = arith.constant 0 : i32
    return %c0_i32, %c0_i32_0 : i32, i32
  }
  func.func @transform_2(%arg0: i32) -> (i32, i32) {
    %c0_i32 = arith.constant 0 : i32
    %c0_i32_0 = arith.constant 0 : i32
    return %arg0, %c0_i32 : i32, i32
  }
  func.func @transform_3(%arg0: i32) -> (i32, i32) {
    %c0_i32 = arith.constant 0 : i32
    %c0_i32_0 = arith.constant 0 : i32
    return %arg0, %c0_i32 : i32, i32
  }
}

</mosaic_0001>

<bundles_post_ra>
// kernel: tpu_custom_call.1
= control target key start
LH: loop header
LB: loop body
LE: loop exit
PB: predicated region body
PF: predicated region fallthrough
CT: control target
= control target key end

     0   :  { %9 = vsyncpa [#allocation3], 0  ;;  %s647_s0 = inlined_call_operand.hbm [shape: bf16[8,16], index: 0, kind: input, shape index: {}]   ;;  %s648_s1 = inlined_call_operand.hbm [shape: bf16[288,128], index: 1, kind: input, shape index: {}]   ;;  %s649_s2 = inlined_call_operand.hbm [shape: f32[8,8], index: 2, kind: output, shape index: {0}]   ;;  %s650_s3 = inlined_call_operand.vmem [shape: f32[8,1], index: 3, kind: output, shape index: {1}]  }
   0x1   :  { %10 = vsyncpa [#allocation6], 0 }
   0x2   :  { %11 = vsyncpa [#allocation4], 0  ;;  %s553_s12 = smov [#allocation2]   ;;  %s554_s14 = smov [#allocation5]  }
   0x3   :  { %s18_s13 = sshll.u32 %s553_s12, 4  ;;  %s27_s15 = sshll.u32 %s554_s14, 4  ;;  %s19_s13 = int_to_ptr.vmem [resolvable:$true] %s18_s13  ;;  %s581_s15 = int_to_ptr.vmem [resolvable:$true] %s27_s15 }
   0x4   :  { %s481_s18 = scalar_lea.hbm %s647_s0, 64 }
   0x5   :  { %p482_p0 = scmp.ne.s32.totalorder %s647_s0, %s481_s18  ;;  %p485_p1 = scmp.lt.u32.totalorder %s481_s18, %s647_s0 }
   0x7   :  { %p487_p2 = pnand %p485_p1, %p482_p0 }
   0x9   :  { %490 = shalt.err (!%p487_p2)
}
   0xa   :  { %s491_s23 = scalar_lea.vmem %s19_s13, 64  ;;  %p496_p4 = scmp.lt.s32.totalorder %s19_s13, %s19_s13 }
   0xb   :  { %p492_p3 = scmp.ne.s32.totalorder %s19_s13, %s491_s23  ;;  %p497_p5 = scmp.lt.s32.totalorder %s491_s23, %s491_s23 }
   0xd   :  { %p498_p6 = por %p497_p5, %p496_p4 }
   0xf   :  { %p499_p7 = pnand %p498_p6, %p492_p3 }
  0x11   :  { %502 = shalt.err (!%p499_p7)
}
  0x12   :  { %21 = dma.hbm_to_vmem [thread:$0]  %s647_s0, 64, %s19_s13, [#allocation3]  }
  0x13   :  { %s503_s28 = scalar_lea.hbm %s648_s1, 2304 }
  0x14   :  { %p504_p8 = scmp.ne.s32.totalorder %s648_s1, %s503_s28  ;;  %p507_p9 = scmp.lt.u32.totalorder %s503_s28, %s648_s1 }
  0x16   :  { %p509_p10 = pnand %p507_p9, %p504_p8 }
  0x18   :  { %512 = shalt.err (!%p509_p10)
}
  0x19   :  { %s513_s6 = scalar_lea.vmem %s581_s15, 2304  ;;  %p518_p12 = scmp.lt.s32.totalorder %s581_s15, %s581_s15 }
  0x1a   :  { %p514_p11 = scmp.ne.s32.totalorder %s581_s15, %s513_s6  ;;  %p519_p13 = scmp.lt.s32.totalorder %s513_s6, %s513_s6 }
  0x1c   :  { %p520_p0 = por %p519_p13, %p518_p12 }
  0x1e   :  { %p521_p1 = pnand %p520_p0, %p514_p11 }
  0x20   :  { %524 = shalt.err (!%p521_p1)
}
  0x21   :  { %s555_s0 = smov 64   ;;  %s556_s7 = smov 4  }
  0x22   :  { %33 = dma.hbm_to_vmem [thread:$0]  %s648_s1, 2304, %s581_s15, [#allocation6], %s555_s0, %s555_s0, %s556_s7  }
  0x23   :  { %547 = dma.done.wait [#allocation3], 64  }
  0x24   :  { %548 = vsyncadd [#allocation3], 4294967232 }
  0x25   :  { %549 = dma.done.wait [#allocation6], 2304  }
  0x26   :  { %550 = vsyncadd [#allocation6], 4294964992  ;;  %v557_v0 = vmov 0.0   ;;  %vm558_vm0 = vmmov 0   ;;  %v456_v1 = vld [vmem:[#allocation5] sm:$0xff]   ;;  %vm90_vm1 = vcmask 130048   ;;  %v80_v15 = vlaneseq }
  0x27   :  { %402 = vmatprep.subr.bf16.mxu0 %v557_v0  ;;  %404 = vmatprep.mubr.msk.bf16.mxu0 %vm558_vm0, %v557_v0  ;;  %v41_v2 = vld [vmem:[#allocation2] sm:$0xf]  ;;  %v457_v3 = vld [vmem:[#allocation5 + $0x8] sm:$0xff]   ;;  %v458_v4 = vld [vmem:[#allocation5 + $0x10] sm:$0xff]   ;;  %s559_s1 = smov 120   ;;  %vm342_vm2 = vcmask 7168  }
  0x28   :  { %408 = vmatprep.subr.bf16.mxu1 %v557_v0  ;;  %424 = vmatprep.mubr.msk.bf16.mxu1 %vm558_vm0, %v557_v0  ;;  %v459_v5 = vld [vmem:[#allocation5 + $0x18] sm:$0xff]   ;;  %v460_v6 = vld [vmem:[#allocation5 + $0x20] sm:$0xff]   ;;  %v461_v7 = vld [vmem:[#allocation5 + $0x28] sm:$0xff]   ;;  %v81_v16 = vshrl.u32 %v80_v15, 7  ;;  %s560_s12 = smov [#allocation7]   ;;  %vm336_vm3 = vcmask 64512  }
  0x29   :  { %403 = vmatpush3.bf16.msra.mxu0 %v456_v1  ;;  %409 = vmatpush3.bf16.msra.mxu1 %v457_v3  ;;  %v462_v8 = vld [vmem:[#allocation5 + $0x30] sm:$0xff]   ;;  %v463_v9 = vld [vmem:[#allocation5 + $0x38] sm:$0xff]   ;;  %v464_v10 = vld [vmem:[#allocation5 + $0x40] sm:$0xff]   ;;  %s350_s13 = sshll.u32 %s560_s12, 4  ;;  %s351_s13 = int_to_ptr.vmem [resolvable:$true] %s350_s13 }
  0x2a   :  { %428 = vmatprep.subr.bf16.mxu0 %v557_v0  ;;  %410 = vmatprep.subr.bf16.mxu1 %v557_v0  ;;  %v465_v11 = vld [vmem:[#allocation5 + $0x48] sm:$0xff]   ;;  %v466_v12 = vld [vmem:[#allocation5 + $0x50] sm:$0xff]   ;;  %v467_v13 = vld [vmem:[#allocation5 + $0x58] sm:$0xff]   ;;  %v82_v19 = vsub.s32 0, %v81_v16  ;;  %v138_v32 = vsub.s32 1, %v81_v16  ;;  %v232_v43 = vsub.s32 2, %v81_v16  ;;  %p530_p3 = scmp.lt.s32.totalorder %s351_s13, %s351_s13 }
  0x2b   :  { %v468_v14 = vld [vmem:[#allocation5 + $0x60] sm:$0xff]   ;;  %v76_v17 = vld [vmem:[#allocation5 + $0x88] sm:$0x1]  ;;  %v470_v29 = vld [vmem:[#allocation5 + $0x70] sm:$0xff]   ;;  %v324_v44 = vsub.s32 3, %v81_v16  ;;  %s525_s14 = scalar_lea.vmem %s351_s13, 128 }
  0x2c   :  { %405 = vmatmul.mubr.msk.bf16.vlgmr.msra.gmra.mrb[0].mxu0 %vm90_vm1, %v41_v2  ;;  %v77_v18 = vunpack.c.l.bf16 %v76_v17  ;;  %v469_v28 = vld [vmem:[#allocation5 + $0x68] sm:$0xff]   ;;  %v471_v30 = vld [vmem:[#allocation5 + $0x78] sm:$0xff]   ;;  %v472_v31 = vld [vmem:[#allocation5 + $0x80] sm:$0xff]   ;;  %p526_p2 = scmp.ne.s32.totalorder %s351_s13, %s525_s14  ;;  %p531_p4 = scmp.lt.s32.totalorder %s525_s14, %s525_s14 }
  0x2d   :  { %444 = vmatprep.mubr.msk.bf16.mxu0 %vm558_vm0, %v557_v0  ;;  %411 = vmatpush3.bf16.msra.mxu1 %v458_v4  ;;  %v78_v41 = vld [vmem:[#allocation5 + $0x88] sm:$0x2] }
  0x2e   :  { %412 = vmatprep.subr.bf16.mxu1 %v557_v0  ;;  %429 = vmatpush3.bf16.msra.mxu0 %v465_v11  ;;  %v83_v20 = vrot.slane %v77_v18, %v82_v19  ;;  %v139_v33 = vrot.slane %v77_v18, %v138_v32  ;;  %v79_v42 = vunpack.c.l.bf16 %v78_v41  ;;  %p532_p5 = por %p531_p4, %p530_p3 }
  0x2f   :  { %430 = vmatprep.subr.bf16.mxu0 %v557_v0 }
  0x30   :  { %v233_v45 = vrot.slane %v79_v42, %v232_v43  ;;  %v325_v46 = vrot.slane %v79_v42, %v324_v44  ;;  %p533_p6 = pnand %p532_p5, %p526_p2 }
  0x31   :  { %413 = vmatpush3.bf16.msra.mxu1 %v459_v5 }
  0x32   :  { %414 = vmatprep.subr.bf16.mxu1 %v557_v0  ;;  %431 = vmatpush3.bf16.msra.mxu0 %v466_v12 }
  0x33   :  { %432 = vmatprep.subr.bf16.mxu0 %v557_v0 }
  0x35   :  { %415 = vmatpush3.bf16.msra.mxu1 %v460_v6 }
  0x36   :  { %416 = vmatprep.subr.bf16.mxu1 %v557_v0  ;;  %433 = vmatpush3.bf16.msra.mxu0 %v467_v13 }
  0x37   :  { %434 = vmatprep.subr.bf16.mxu0 %v557_v0 }
  0x39   :  { %417 = vmatpush3.bf16.msra.mxu1 %v461_v7 }
  0x3a   :  { %418 = vmatprep.subr.bf16.mxu1 %v557_v0  ;;  %435 = vmatpush3.bf16.msra.mxu0 %v468_v14 }
  0x3b   :  { %436 = vmatprep.subr.bf16.mxu0 %v557_v0 }
  0x3d   :  { %419 = vmatpush3.bf16.msra.mxu1 %v462_v8 }
  0x3e   :  { %420 = vmatprep.subr.bf16.mxu1 %v557_v0  ;;  %437 = vmatpush3.bf16.msra.mxu0 %v469_v28 }
  0x3f   :  { %438 = vmatprep.subr.bf16.mxu0 %v557_v0 }
  0x41   :  { %421 = vmatpush3.bf16.msra.mxu1 %v463_v9 }
  0x42   :  { %422 = vmatprep.subr.bf16.mxu1 %v557_v0  ;;  %439 = vmatpush3.bf16.msra.mxu0 %v470_v29 }
  0x43   :  { %440 = vmatprep.subr.bf16.mxu0 %v557_v0 }
  0x45   :  { %423 = vmatpush3.bf16.msra.mxu1 %v464_v10 }
  0x46   :  { %441 = vmatpush3.bf16.msra.mxu0 %v471_v30 }
  0x47   :  { %442 = vmatprep.subr.bf16.mxu0 %v557_v0 }
  0x4a   :  { %443 = vmatpush3.bf16.msra.mxu0 %v472_v31 }
  0xff   :  { %v128_v21 = vpop.f32.mrb[0].mxu0 }
 0x100   :  { %v129_v22 = vadd.f32 %v128_v21, %v83_v20  ;;  %v406_v23 = vpop.f32.mrb[1].mxu0 }
 0x101   :  { %v131_v24 = vpop.f32.mrb[2].mxu0 }
 0x102   :  { %473 = vtanh.f32 %v129_v22  ;;  %v407_v25 = vpop.f32.mrb[3].mxu0 }
 0x10c   :  { %v474_v26 = vpop.eup %473 }
 0x10d   :  { %v135_v27 = vpack.c.bf16 %v474_v26, %v474_v26 }
 0x10f   :  { %425 = vmatmul.mubr.bf16.vlgmr.msra.gmra.mrb[0].mxu1 %v135_v27 }
 0x1e2   :  { %v222_v34 = vpop.f32.mrb[0].mxu1 }
 0x1e3   :  { %v223_v35 = vadd.f32 %v222_v34, %v139_v33  ;;  %v426_v36 = vpop.f32.mrb[1].mxu1 }
 0x1e4   :  { %v225_v37 = vpop.f32.mrb[2].mxu1 }
 0x1e5   :  { %475 = vtanh.f32 %v223_v35  ;;  %v427_v38 = vpop.f32.mrb[3].mxu1 }
 0x1ef   :  { %v476_v39 = vpop.eup %475 }
 0x1f0   :  { %v229_v40 = vpack.c.bf16 %v476_v39, %v476_v39 }
 0x1f2   :  { %445 = vmatmul.mubr.bf16.vlgmr.msra.gmra.mrb[4].mxu0 %v229_v40 }
 0x2c5   :  { %v316_v47 = vpop.f32.mrb[4].mxu0 }
 0x2c6   :  { %v317_v48 = vadd.f32 %v316_v47, %v233_v45  ;;  %v446_v49 = vpop.f32.mrb[5].mxu0 }
 0x2c7   :  { %v319_v50 = vpop.f32.mrb[6].mxu0 }
 0x2c8   :  { %339 = vrot.lane.b32.xlu1 %v317_v48, %s559_s1  ;;  %v447_v51 = vpop.f32.mrb[7].mxu0  ;;  %v326_v52 = vadd.f32 %v325_v46, %v317_v48 }
 0x2ca   :  { %327 = vmax.xlane.f32.xlu0 %v326_v52 }
 0x33a   :  { %v340_v53 = vpop.permute.xlu1 %339 }
 0x33b   :  { %343 = vst.msk [vmem:[%s650_s3] sm:$0xff] %vm342_vm2, %v340_v53 }
 0x357   :  { %v328_v54 = vpop.xlane.xlu0 %327 }
 0x358   :  { %v329_v55 = vsub.f32 %v326_v52, %v328_v54 }
 0x35a   :  { %v330_v56 = vmul.f32 1.442695, %v329_v55 }
 0x35c   :  { %477 = vpow2.f32 %v330_v56 }
 0x366   :  { %v478_v57 = vpop.eup %477 }
 0x367   :  { %332 = vadd.xlane.f32.xlu0 %v478_v57 }
 0x3f4   :  { %v333_v58 = vpop.xlane.xlu0 %332 }
 0x3f5   :  { %479 = vrcp.f32 %v333_v58 }
 0x3ff   :  { %v480_v59 = vpop.eup %479 }
 0x400   :  { %v335_v60 = vmul.f32 %v480_v59, %v478_v57 }
 0x402   :  { %337 = vst.msk [vmem:[#allocation7] sm:$0xff] %vm336_vm3, %v335_v60 }
 0x403   :  { %536 = shalt.err (!%p533_p6)
}
 0x404   :  { %s537_s16 = scalar_lea.hbm %s649_s2, 128 }
 0x405   :  { %p538_p7 = scmp.ne.s32.totalorder %s649_s2, %s537_s16  ;;  %p541_p8 = scmp.lt.u32.totalorder %s537_s16, %s649_s2 }
 0x407   :  { %p543_p9 = pnand %p541_p8, %p538_p7 }
 0x409   :  { %546 = shalt.err (!%p543_p9)
}
 0x40a   :  { %353 = dma.vmem_to_hbm [thread:$0]  %s351_s13, 128, %s649_s2, [#allocation4]  }
 0x40b   :  { %551 = dma.done.wait [#allocation4], 128  }
 0x40c   :  { %552 = vsyncadd [#allocation4], 4294967168 }
 0x40d   :  { %361 = vsyncpa [#allocation3], 1 }
 0x40e   :  { %362 = vsyncpa [#allocation6], 1 }
 0x40f   :  { %363 = vsyncpa [#allocation4], 1 }

// kernel: tpu_custom_call.1
= control target key start
LH: loop header
LB: loop body
LE: loop exit
PB: predicated region body
PF: predicated region fallthrough
CT: control target
= control target key end

     0   :  { %9 = vsyncpa [#allocation3], 0  ;;  %s647_s0 = inlined_call_operand.hbm [shape: bf16[8,16], index: 0, kind: input, shape index: {}]   ;;  %s648_s1 = inlined_call_operand.hbm [shape: bf16[288,128], index: 1, kind: input, shape index: {}]   ;;  %s649_s2 = inlined_call_operand.hbm [shape: f32[8,8], index: 2, kind: output, shape index: {0}]   ;;  %s650_s3 = inlined_call_operand.vmem [shape: f32[8,1], index: 3, kind: output, shape index: {1}]  }
   0x1   :  { %10 = vsyncpa [#allocation6], 0 }
   0x2   :  { %11 = vsyncpa [#allocation4], 0  ;;  %s553_s12 = smov [#allocation2]   ;;  %s554_s14 = smov [#allocation5]  }
   0x3   :  { %s18_s13 = sshll.u32 %s553_s12, 4  ;;  %s27_s15 = sshll.u32 %s554_s14, 4  ;;  %s19_s13 = int_to_ptr.vmem [resolvable:$true] %s18_s13  ;;  %s581_s15 = int_to_ptr.vmem [resolvable:$true] %s27_s15 }
   0x4   :  { %s481_s18 = scalar_lea.hbm %s647_s0, 64 }
   0x5   :  { %p482_p0 = scmp.ne.s32.totalorder %s647_s0, %s481_s18  ;;  %p485_p1 = scmp.lt.u32.totalorder %s481_s18, %s647_s0 }
   0x7   :  { %p487_p2 = pnand %p485_p1, %p482_p0 }
   0x9   :  { %490 = shalt.err (!%p487_p2)
}
   0xa   :  { %s491_s23 = scalar_lea.vmem %s19_s13, 64  ;;  %p496_p4 = scmp.lt.s32.totalorder %s19_s13, %s19_s13 }
   0xb   :  { %p492_p3 = scmp.ne.s32.totalorder %s19_s13, %s491_s23  ;;  %p497_p5 = scmp.lt.s32.totalorder %s491_s23, %s491_s23 }
   0xd   :  { %p498_p6 = por %p497_p5, %p496_p4 }
   0xf   :  { %p499_p7 = pnand %p498_p6, %p492_p3 }
  0x11   :  { %502 = shalt.err (!%p499_p7)
}
  0x12   :  { %21 = dma.hbm_to_vmem [thread:$0]  %s647_s0, 64, %s19_s13, [#allocation3]  }
  0x13   :  { %s503_s28 = scalar_lea.hbm %s648_s1, 2304 }
  0x14   :  { %p504_p8 = scmp.ne.s32.totalorder %s648_s1, %s503_s28  ;;  %p507_p9 = scmp.lt.u32.totalorder %s503_s28, %s648_s1 }
  0x16   :  { %p509_p10 = pnand %p507_p9, %p504_p8 }
  0x18   :  { %512 = shalt.err (!%p509_p10)
}
  0x19   :  { %s513_s6 = scalar_lea.vmem %s581_s15, 2304  ;;  %p518_p12 = scmp.lt.s32.totalorder %s581_s15, %s581_s15 }
  0x1a   :  { %p514_p11 = scmp.ne.s32.totalorder %s581_s15, %s513_s6  ;;  %p519_p13 = scmp.lt.s32.totalorder %s513_s6, %s513_s6 }
  0x1c   :  { %p520_p0 = por %p519_p13, %p518_p12 }
  0x1e   :  { %p521_p1 = pnand %p520_p0, %p514_p11 }
  0x20   :  { %524 = shalt.err (!%p521_p1)
}
  0x21   :  { %s555_s0 = smov 64   ;;  %s556_s7 = smov 4  }
  0x22   :  { %33 = dma.hbm_to_vmem [thread:$0]  %s648_s1, 2304, %s581_s15, [#allocation6], %s555_s0, %s555_s0, %s556_s7  }
  0x23   :  { %547 = dma.done.wait [#allocation3], 64  }
  0x24   :  { %548 = vsyncadd [#allocation3], 4294967232 }
  0x25   :  { %549 = dma.done.wait [#allocation6], 2304  }
  0x26   :  { %550 = vsyncadd [#allocation6], 4294964992  ;;  %v557_v0 = vmov 0.0   ;;  %vm558_vm0 = vmmov 0   ;;  %v456_v1 = vld [vmem:[#allocation5] sm:$0xff]   ;;  %vm90_vm1 = vcmask 130048   ;;  %v80_v15 = vlaneseq }
  0x27   :  { %402 = vmatprep.subr.bf16.mxu0 %v557_v0  ;;  %404 = vmatprep.mubr.msk.bf16.mxu0 %vm558_vm0, %v557_v0  ;;  %v41_v2 = vld [vmem:[#allocation2] sm:$0xf]  ;;  %v457_v3 = vld [vmem:[#allocation5 + $0x8] sm:$0xff]   ;;  %v458_v4 = vld [vmem:[#allocation5 + $0x10] sm:$0xff]   ;;  %s559_s1 = smov 120   ;;  %vm342_vm2 = vcmask 7168  }
  0x28   :  { %408 = vmatprep.subr.bf16.mxu1 %v557_v0  ;;  %424 = vmatprep.mubr.msk.bf16.mxu1 %vm558_vm0, %v557_v0  ;;  %v459_v5 = vld [vmem:[#allocation5 + $0x18] sm:$0xff]   ;;  %v460_v6 = vld [vmem:[#allocation5 + $0x20] sm:$0xff]   ;;  %v461_v7 = vld [vmem:[#allocation5 + $0x28] sm:$0xff]   ;;  %v81_v16 = vshrl.u32 %v80_v15, 7  ;;  %s560_s12 = smov [#allocation7]   ;;  %vm336_vm3 = vcmask 64512  }
  0x29   :  { %403 = vmatpush3.bf16.msra.mxu0 %v456_v1  ;;  %409 = vmatpush3.bf16.msra.mxu1 %v457_v3  ;;  %v462_v8 = vld [vmem:[#allocation5 + $0x30] sm:$0xff]   ;;  %v463_v9 = vld [vmem:[#allocation5 + $0x38] sm:$0xff]   ;;  %v464_v10 = vld [vmem:[#allocation5 + $0x40] sm:$0xff]   ;;  %s350_s13 = sshll.u32 %s560_s12, 4  ;;  %s351_s13 = int_to_ptr.vmem [resolvable:$true] %s350_s13 }
  0x2a   :  { %428 = vmatprep.subr.bf16.mxu0 %v557_v0  ;;  %410 = vmatprep.subr.bf16.mxu1 %v557_v0  ;;  %v465_v11 = vld [vmem:[#allocation5 + $0x48] sm:$0xff]   ;;  %v466_v12 = vld [vmem:[#allocation5 + $0x50] sm:$0xff]   ;;  %v467_v13 = vld [vmem:[#allocation5 + $0x58] sm:$0xff]   ;;  %v82_v19 = vsub.s32 0, %v81_v16  ;;  %v138_v32 = vsub.s32 1, %v81_v16  ;;  %v232_v43 = vsub.s32 2, %v81_v16  ;;  %p530_p3 = scmp.lt.s32.totalorder %s351_s13, %s351_s13 }
  0x2b   :  { %v468_v14 = vld [vmem:[#allocation5 + $0x60] sm:$0xff]   ;;  %v76_v17 = vld [vmem:[#allocation5 + $0x88] sm:$0x1]  ;;  %v470_v29 = vld [vmem:[#allocation5 + $0x70] sm:$0xff]   ;;  %v324_v44 = vsub.s32 3, %v81_v16  ;;  %s525_s14 = scalar_lea.vmem %s351_s13, 128 }
  0x2c   :  { %405 = vmatmul.mubr.msk.bf16.vlgmr.msra.gmra.mrb[0].mxu0 %vm90_vm1, %v41_v2  ;;  %v77_v18 = vunpack.c.l.bf16 %v76_v17  ;;  %v469_v28 = vld [vmem:[#allocation5 + $0x68] sm:$0xff]   ;;  %v471_v30 = vld [vmem:[#allocation5 + $0x78] sm:$0xff]   ;;  %v472_v31 = vld [vmem:[#allocation5 + $0x80] sm:$0xff]   ;;  %p526_p2 = scmp.ne.s32.totalorder %s351_s13, %s525_s14  ;;  %p531_p4 = scmp.lt.s32.totalorder %s525_s14, %s525_s14 }
  0x2d   :  { %444 = vmatprep.mubr.msk.bf16.mxu0 %vm558_vm0, %v557_v0  ;;  %411 = vmatpush3.bf16.msra.mxu1 %v458_v4  ;;  %v78_v41 = vld [vmem:[#allocation5 + $0x88] sm:$0x2] }
  0x2e   :  { %412 = vmatprep.subr.bf16.mxu1 %v557_v0  ;;  %429 = vmatpush3.bf16.msra.mxu0 %v465_v11  ;;  %v83_v20 = vrot.slane %v77_v18, %v82_v19  ;;  %v139_v33 = vrot.slane %v77_v18, %v138_v32  ;;  %v79_v42 = vunpack.c.l.bf16 %v78_v41  ;;  %p532_p5 = por %p531_p4, %p530_p3 }
  0x2f   :  { %430 = vmatprep.subr.bf16.mxu0 %v557_v0 }
  0x30   :  { %v233_v45 = vrot.slane %v79_v42, %v232_v43  ;;  %v325_v46 = vrot.slane %v79_v42, %v324_v44  ;;  %p533_p6 = pnand %p532_p5, %p526_p2 }
  0x31   :  { %413 = vmatpush3.bf16.msra.mxu1 %v459_v5 }
  0x32   :  { %414 = vmatprep.subr.bf16.mxu1 %v557_v0  ;;  %431 = vmatpush3.bf16.msra.mxu0 %v466_v12 }
  0x33   :  { %432 = vmatprep.subr.bf16.mxu0 %v557_v0 }
  0x35   :  { %415 = vmatpush3.bf16.msra.mxu1 %v460_v6 }
  0x36   :  { %416 = vmatprep.subr.bf16.mxu1 %v557_v0  ;;  %433 = vmatpush3.bf16.msra.mxu0 %v467_v13 }
  0x37   :  { %434 = vmatprep.subr.bf16.mxu0 %v557_v0 }
  0x39   :  { %417 = vmatpush3.bf16.msra.mxu1 %v461_v7 }
  0x3a   :  { %418 = vmatprep.subr.bf16.mxu1 %v557_v0  ;;  %435 = vmatpush3.bf16.msra.mxu0 %v468_v14 }
  0x3b   :  { %436 = vmatprep.subr.bf16.mxu0 %v557_v0 }
  0x3d   :  { %419 = vmatpush3.bf16.msra.mxu1 %v462_v8 }
  0x3e   :  { %420 = vmatprep.subr.bf16.mxu1 %v557_v0  ;;  %437 = vmatpush3.bf16.msra.mxu0 %v469_v28 }
  0x3f   :  { %438 = vmatprep.subr.bf16.mxu0 %v557_v0 }
  0x41   :  { %421 = vmatpush3.bf16.msra.mxu1 %v463_v9 }
  0x42   :  { %422 = vmatprep.subr.bf16.mxu1 %v557_v0  ;;  %439 = vmatpush3.bf16.msra.mxu0 %v470_v29 }
  0x43   :  { %440 = vmatprep.subr.bf16.mxu0 %v557_v0 }
  0x45   :  { %423 = vmatpush3.bf16.msra.mxu1 %v464_v10 }
  0x46   :  { %441 = vmatpush3.bf16.msra.mxu0 %v471_v30 }
  0x47   :  { %442 = vmatprep.subr.bf16.mxu0 %v557_v0 }
  0x4a   :  { %443 = vmatpush3.bf16.msra.mxu0 %v472_v31 }
  0xff   :  { %v128_v21 = vpop.f32.mrb[0].mxu0 }
 0x100   :  { %v129_v22 = vadd.f32 %v128_v21, %v83_v20  ;;  %v406_v23 = vpop.f32.mrb[1].mxu0 }
 0x101   :  { %v131_v24 = vpop.f32.mrb[2].mxu0 }
 0x102   :  { %473 = vtanh.f32 %v129_v22  ;;  %v407_v25 = vpop.f32.mrb[3].mxu0 }
 0x10c   :  { %v474_v26 = vpop.eup %473 }
 0x10d   :  { %v135_v27 = vpack.c.bf16 %v474_v26, %v474_v26 }
 0x10f   :  { %425 = vmatmul.mubr.bf16.vlgmr.msra.gmra.mrb[0].mxu1 %v135_v27 }
 0x1e2   :  { %v222_v34 = vpop.f32.mrb[0].mxu1 }
 0x1e3   :  { %v223_v35 = vadd.f32 %v222_v34, %v139_v33  ;;  %v426_v36 = vpop.f32.mrb[1].mxu1 }
 0x1e4   :  { %v225_v37 = vpop.f32.mrb[2].mxu1 }
 0x1e5   :  { %475 = vtanh.f32 %v223_v35  ;;  %v427_v38 = vpop.f32.mrb[3].mxu1 }
 0x1ef   :  { %v476_v39 = vpop.eup %475 }
 0x1f0   :  { %v229_v40 = vpack.c.bf16 %v476_v39, %v476_v39 }
 0x1f2   :  { %445 = vmatmul.mubr.bf16.vlgmr.msra.gmra.mrb[4].mxu0 %v229_v40 }
 0x2c5   :  { %v316_v47 = vpop.f32.mrb[4].mxu0 }
 0x2c6   :  { %v317_v48 = vadd.f32 %v316_v47, %v233_v45  ;;  %v446_v49 = vpop.f32.mrb[5].mxu0 }
 0x2c7   :  { %v319_v50 = vpop.f32.mrb[6].mxu0 }
 0x2c8   :  { %339 = vrot.lane.b32.xlu1 %v317_v48, %s559_s1  ;;  %v447_v51 = vpop.f32.mrb[7].mxu0  ;;  %v326_v52 = vadd.f32 %v325_v46, %v317_v48 }
 0x2ca   :  { %327 = vmax.xlane.f32.xlu0 %v326_v52 }
 0x33a   :  { %v340_v53 = vpop.permute.xlu1 %339 }
 0x33b   :  { %343 = vst.msk [vmem:[%s650_s3] sm:$0xff] %vm342_vm2, %v340_v53 }
 0x357   :  { %v328_v54 = vpop.xlane.xlu0 %327 }
 0x358   :  { %v329_v55 = vsub.f32 %v326_v52, %v328_v54 }
 0x35a   :  { %v330_v56 = vmul.f32 1.442695, %v329_v55 }
 0x35c   :  { %477 = vpow2.f32 %v330_v56 }
 0x366   :  { %v478_v57 = vpop.eup %477 }
 0x367   :  { %332 = vadd.xlane.f32.xlu0 %v478_v57 }
 0x3f4   :  { %v333_v58 = vpop.xlane.xlu0 %332 }
 0x3f5   :  { %479 = vrcp.f32 %v333_v58 }
 0x3ff   :  { %v480_v59 = vpop.eup %479 }
 0x400   :  { %v335_v60 = vmul.f32 %v480_v59, %v478_v57 }
 0x402   :  { %337 = vst.msk [vmem:[#allocation7] sm:$0xff] %vm336_vm3, %v335_v60 }
 0x403   :  { %536 = shalt.err (!%p533_p6)
}
 0x404   :  { %s537_s16 = scalar_lea.hbm %s649_s2, 128 }
 0x405   :  { %p538_p7 = scmp.ne.s32.totalorder %s649_s2, %s537_s16  ;;  %p541_p8 = scmp.lt.u32.totalorder %s537_s16, %s649_s2 }
 0x407   :  { %p543_p9 = pnand %p541_p8, %p538_p7 }
 0x409   :  { %546 = shalt.err (!%p543_p9)
}
 0x40a   :  { %353 = dma.vmem_to_hbm [thread:$0]  %s351_s13, 128, %s649_s2, [#allocation4]  }
 0x40b   :  { %551 = dma.done.wait [#allocation4], 128  }
 0x40c   :  { %552 = vsyncadd [#allocation4], 4294967168 }
 0x40d   :  { %361 = vsyncpa [#allocation3], 1 }
 0x40e   :  { %362 = vsyncpa [#allocation6], 1 }
 0x40f   :  { %363 = vsyncpa [#allocation4], 1 }

</bundles_post_ra>
